<compile_context>
chip_gen: v6e
topology: v6e:2x2x1
jax: 0.10.0
libtpu: 0.0.40
codegen_flags: <defaults>
</compile_context>

<pallas_src>
import jax
import jax.numpy as jnp
from jax.experimental import pallas as pl
from jax.experimental.pallas import tpu as pltpu


_VMEM = pl.BlockSpec(memory_space=pltpu.MemorySpace.VMEM)


# ---------------------------------------------------------------------------
# Per-call kernel: class prompts.
#   out[b, c, :, :] = [ prefix[c] | ctx[b] | suffix[c] ]  along the token axis
# ---------------------------------------------------------------------------
def _class_prompt_kernel(ctx_ref, ps_ref, out_ref):
    # ctx_ref: (B, Lc, D)   ps_ref: (C, 1 + Ls, D)   out_ref: (B, C, T, D)
    B, Lc, D = ctx_ref.shape
    C = ps_ref.shape[0]
    Ls = ps_ref.shape[1] - 1

    pre = ps_ref[:, 0:1, :]                                    # (C, 1, D)
    suf = ps_ref[:, 1:, :]                                     # (C, Ls, D)

    out_ref[:, :, 0:1, :] = jnp.broadcast_to(pre[None], (B, C, 1, D))
    out_ref[:, :, 1:1 + Lc, :] = jnp.broadcast_to(
        ctx_ref[...][:, None, :, :], (B, C, Lc, D))
    out_ref[:, :, 1 + Lc:, :] = jnp.broadcast_to(suf[None], (B, C, Ls, D))


def assemble_class_prompts(ctx, prefix_suffix_packed, seq_len):
    """ctx: (B, Lc, D); prefix_suffix_packed: (C, 1+Ls, D) -> (B, C, T, D)."""
    B, Lc, D = ctx.shape
    C, one_ls, D2 = prefix_suffix_packed.shape
    Ls = one_ls - 1
    assert D == D2, "ctx / constant embedding dims disagree"
    assert 1 + Lc + Ls == seq_len, (
        f"prefix(1) + ctx({Lc}) + suffix({Ls}) != seq_len({seq_len})")
    return pl.pallas_call(
        _class_prompt_kernel,
        out_shape=jax.ShapeDtypeStruct((B, C, seq_len, D), ctx.dtype),
        in_specs=[_VMEM, _VMEM],
        out_specs=_VMEM,
    )(ctx, prefix_suffix_packed)


# ---------------------------------------------------------------------------
# One-time kernel (run in __init__): nc ("no-class") prompts.
#   out[p, :, :] = [ nc_prefix | global[p] ++ attribute[p] | nc_suffix ]
# ---------------------------------------------------------------------------
def _nc_prompt_kernel(pool_ref, nc_ps_ref, out_ref):
    # pool_ref: (P, Lc2, D)   nc_ps_ref: (1, 1 + Lsn, D)   out_ref: (P, T, D)
    P, Lc2, D = pool_ref.shape
    Lsn = nc_ps_ref.shape[1] - 1

    out_ref[:, 0:1, :] = jnp.broadcast_to(nc_ps_ref[:, 0:1, :], (P, 1, D))
    out_ref[:, 1:1 + Lc2, :] = pool_ref[...]
    out_ref[:, 1 + Lc2:, :] = jnp.broadcast_to(nc_ps_ref[:, 1:, :], (P, Lsn, D))


def assemble_nc_prompts(pool_packed, nc_prefix_suffix_packed, seq_len):
    """pool_packed: (P, 2*Lg, D); nc_prefix_suffix_packed: (1, 1+Lsn, D)."""
    P, Lc2, D = pool_packed.shape
    Lsn = nc_prefix_suffix_packed.shape[1] - 1
    assert 1 + Lc2 + Lsn == seq_len, (
        f"nc prefix(1) + pool-ctx({Lc2}) + nc suffix({Lsn}) != seq_len({seq_len})")
    return pl.pallas_call(
        _nc_prompt_kernel,
        out_shape=jax.ShapeDtypeStruct((P, seq_len, D), pool_packed.dtype),
        in_specs=[_VMEM, _VMEM],
        out_specs=_VMEM,
    )(pool_packed, nc_prefix_suffix_packed)


# ---------------------------------------------------------------------------
# PromptLearner (JAX/Pallas version, prompt_pos == 2)
# ---------------------------------------------------------------------------
class PromptLearnerPallas:
    def __init__(self, key, *, cls_num=3, ctx_len=8, ctx_dim=32, seq_len=16,
                 pool_size=5, text_prompt=1, dtype=jnp.float32):
        assert ctx_len % 2 == 0
        self.cls_num = cls_num
        self.ctx_len = ctx_len
        self.ctx_dim = ctx_dim
        self.seq_len = seq_len
        self.pool_size = pool_size
        self.text_prompt = text_prompt
        self.dtype = dtype

        lg = ctx_len // 2                              # global / attribute length
        suffix_len = seq_len - 1 - ctx_len * text_prompt
        nc_suffix_len = seq_len - 1 - ctx_len
        assert suffix_len > 0 and nc_suffix_len > 0

        ks = jax.random.split(key, 8)
        # prompt-pool parameters
        self.global_prompt = jax.random.normal(ks[0], (pool_size, lg, ctx_dim), dtype)
        self.attribute_prompt = jax.random.normal(ks[1], (pool_size, lg, ctx_dim), dtype)
        # frozen CLIP token-embedding buffers (synthetic, deterministic)
        self.token_prefix = jax.random.normal(ks[2], (cls_num, 1, ctx_dim), dtype)
        self.token_suffix = jax.random.normal(ks[3], (cls_num, suffix_len, ctx_dim), dtype)
        self.nc_token_prefix = jax.random.normal(ks[4], (1, 1, ctx_dim), dtype)
        self.nc_token_suffix = jax.random.normal(ks[5], (1, nc_suffix_len, ctx_dim), dtype)
        # synthetic tokenized prompts (integer token ids)
        self.tokenized_prompts = jax.random.randint(
            ks[6], (cls_num, seq_len), 0, 49408, dtype=jnp.int32)
        self.nc_tokenized_prompts = jax.random.randint(
            ks[7], (1, seq_len), 0, 49408, dtype=jnp.int32)

        # ---- one-time packing of frozen per-class constants (1 DMA / call) --
        self.prefix_suffix_packed = jnp.concatenate(
            [self.token_prefix, self.token_suffix], axis=1)        # (C, 1+Ls, D)

        # ---- one-time nc-prompt assembly (index-independent -> cached) ------
        pool_packed = jnp.concatenate(
            [self.global_prompt, self.attribute_prompt], axis=1)   # (P, 2*lg, D)
        nc_ps_packed = jnp.concatenate(
            [self.nc_token_prefix, self.nc_token_suffix], axis=1)  # (1, 1+Lsn, D)
        self.nc_prompts = assemble_nc_prompts(
            pool_packed, nc_ps_packed, seq_len)                    # (P, T, D)
        self.nc_tokenized_tiled = jnp.tile(
            self.nc_tokenized_prompts, (pool_size, 1))             # (P, T)

    def __call__(self, indices_g, indices_a):
        B, C, D = indices_g.shape[0], self.cls_num, self.ctx_dim

        # pool gather (plain-JAX glue), exact torch semantics:
        #   ctx = cat([global[idx_g], attr[idx_a]], dim=0).view(B, -1, D)
        # (for B > 1 this mixes prompts across batch elements -- quirk of the
        #  original module, preserved intentionally)
        prom_global = self.global_prompt[indices_g]                # (B, Lg, D)
        prom_attri = self.attribute_prompt[indices_a]              # (B, Lg, D)
        ctx = jnp.concatenate([prom_global, prom_attri], axis=0).reshape(B, -1, D)

        # single per-call Pallas kernel: (B, C, T, D), token-major layout
        prompts = assemble_class_prompts(ctx, self.prefix_suffix_packed, self.seq_len)
        prompts = prompts.reshape(B * C, self.seq_len, D)   # leading-dim collapse (free)

        # integer token-id tiling (pure tile, plain JAX)
        tokenized_prompts = jnp.tile(
            self.tokenized_prompts[None], (B, 1, 1)).reshape(B * C, -1)

        # nc outputs are index-independent -> return the init-time cache
        return prompts, tokenized_prompts, self.nc_prompts, self.nc_tokenized_tiled


# ---------------------------------------------------------------------------
# main
# ---------------------------------------------------------------------------
if __name__ == "__main__":
    key = jax.random.PRNGKey(0)
    model_key, idx_key_g, idx_key_a = jax.random.split(key, 3)

    B, C, D, T, CTX, P = 2, 3, 32, 16, 8, 5
    model = PromptLearnerPallas(model_key, cls_num=C, ctx_len=CTX, ctx_dim=D,
                                seq_len=T, pool_size=P, text_prompt=1)

    indices_g = jax.random.randint(idx_key_g, (B,), 0, P, dtype=jnp.int32)
    indices_a = jax.random.randint(idx_key_a, (B,), 0, P, dtype=jnp.int32)

    fwd = jax.jit(model.__call__)
    prompts, tok, nc_prompts, nc_tok = fwd(indices_g, indices_a)
    jax.block_until_ready((prompts, tok, nc_prompts, nc_tok))

    # ---- correctness check against pure-JAX reference ----
    prom_g = model.global_prompt[indices_g]
    prom_a = model.attribute_prompt[indices_a]
    ctx_ref = jnp.concatenate([prom_g, prom_a], axis=0).reshape(B, -1, D)
    Lc = ctx_ref.shape[1]
    Ls = model.token_suffix.shape[1]
    ref_prompts = jnp.concatenate([
        jnp.broadcast_to(model.token_prefix[None], (B, C, 1, D)),
        jnp.broadcast_to(ctx_ref[:, None], (B, C, Lc, D)),
        jnp.broadcast_to(model.token_suffix[None], (B, C, Ls, D)),
    ], axis=2).reshape(B * C, T, D)

    ctx_pool_ref = jnp.concatenate(
        [model.global_prompt, model.attribute_prompt], axis=1)
    ref_nc = jnp.concatenate([
        jnp.broadcast_to(model.nc_token_prefix, (P, 1, D)),
        ctx_pool_ref,
        jnp.broadcast_to(model.nc_token_suffix, (P, model.nc_token_suffix.shape[1], D)),
    ], axis=1)

    ref_tok = jnp.tile(model.tokenized_prompts[None], (B, 1, 1)).reshape(B * C, -1)
    ref_nc_tok = jnp.tile(model.nc_tokenized_prompts, (P, 1))

    assert prompts.shape == (B * C, T, D)
    assert tok.shape == (B * C, T)
    assert nc_prompts.shape == (P, T, D)
    assert nc_tok.shape == (P, T)
    assert jnp.allclose(prompts, ref_prompts)
    assert jnp.allclose(nc_prompts, ref_nc)
    assert jnp.array_equal(tok, ref_tok)
    assert jnp.array_equal(nc_tok, ref_nc_tok)

    print("KERNEL_OK")
</pallas_src>

<mosaic_0001>
module attributes {stable_mosaic.version = 11 : i64} {
  func.func @_nc_prompt_kernel(%arg0: memref<5x8x32xf32, #tpu.memory_space<vmem>>, %arg1: memref<1x8x32xf32, #tpu.memory_space<vmem>>, %arg2: memref<5x16x32xf32, #tpu.memory_space<vmem>>) attributes {dimension_semantics = [], scalar_prefetch = 0 : i64, scratch_operands = 0 : i64, tpu.core_type = #tpu.core_type<tc>} {
    %c0 = arith.constant 0 : index
    %c0_0 = arith.constant 0 : index
    %c0_1 = arith.constant 0 : index
    %0 = vector.load %arg1[%c0, %c0_0, %c0_1] : memref<1x8x32xf32, #tpu.memory_space<vmem>>, vector<1x1x32xf32>
    %1 = vector.shape_cast %0 : vector<1x1x32xf32> to vector<1x1x32xf32>
    %2 = vector.broadcast %1 : vector<1x1x32xf32> to vector<5x1x32xf32>
    %c0_2 = arith.constant 0 : index
    %c0_3 = arith.constant 0 : index
    %c0_4 = arith.constant 0 : index
    %3 = vector.load %arg2[%c0_2, %c0_3, %c0_4] : memref<5x16x32xf32, #tpu.memory_space<vmem>>, vector<5x1x32xf32>
    tpu.vector_store %arg2[%c0_2, %c0_3, %c0_4], %2 {strides = array<i32>} : memref<5x16x32xf32, #tpu.memory_space<vmem>>, vector<5x1x32xf32>,
    %c0_5 = arith.constant 0 : index
    %c0_6 = arith.constant 0 : index
    %c0_7 = arith.constant 0 : index
    %4 = vector.load %arg0[%c0_5, %c0_6, %c0_7] : memref<5x8x32xf32, #tpu.memory_space<vmem>>, vector<5x8x32xf32>
    %c0_8 = arith.constant 0 : index
    %c1 = arith.constant 1 : index
    %c0_9 = arith.constant 0 : index
    %5 = vector.load %arg2[%c0_8, %c1, %c0_9] : memref<5x16x32xf32, #tpu.memory_space<vmem>>, vector<5x8x32xf32>
    tpu.vector_store %arg2[%c0_8, %c1, %c0_9], %4 {strides = array<i32>} : memref<5x16x32xf32, #tpu.memory_space<vmem>>, vector<5x8x32xf32>,
    %c0_10 = arith.constant 0 : index
    %c1_11 = arith.constant 1 : index
    %c0_12 = arith.constant 0 : index
    %6 = vector.load %arg1[%c0_10, %c1_11, %c0_12] : memref<1x8x32xf32, #tpu.memory_space<vmem>>, vector<1x7x32xf32>
    %7 = vector.shape_cast %6 : vector<1x7x32xf32> to vector<1x7x32xf32>
    %8 = vector.broadcast %7 : vector<1x7x32xf32> to vector<5x7x32xf32>
    %c0_13 = arith.constant 0 : index
    %c9 = arith.constant 9 : index
    %c0_14 = arith.constant 0 : index
    %9 = vector.load %arg2[%c0_13, %c9, %c0_14] : memref<5x16x32xf32, #tpu.memory_space<vmem>>, vector<5x7x32xf32>
    tpu.vector_store %arg2[%c0_13, %c9, %c0_14], %8 {strides = array<i32>} : memref<5x16x32xf32, #tpu.memory_space<vmem>>, vector<5x7x32xf32>,
    return
  }
}

</mosaic_0001>

<bundles_post_ra>
// kernel: tpu_custom_call.1
= control target key start
LH: loop header
LB: loop body
LE: loop exit
PB: predicated region body
PF: predicated region fallthrough
CT: control target
= control target key end

     0   :  { %7 = vsyncpa [#allocation3], 0  ;;  %s197_s0 = inlined_call_operand.hbm [shape: f32[5,8,32], index: 0, kind: input, shape index: {}]   ;;  %s198_s1 = inlined_call_operand.hbm [shape: f32[1,8,32], index: 1, kind: input, shape index: {}]   ;;  %s199_s2 = inlined_call_operand.hbm [shape: f32[5,16,32], index: 2, kind: output, shape index: {}]  }
   0x1   :  { %8 = vsyncpa [#allocation6], 0 }
   0x2   :  { %9 = vsyncpa [#allocation4], 0  ;;  %s152_s9 = smov [#allocation2]  }
   0x3   :  { %s15_s10 = sshll.u32 %s152_s9, 4  ;;  %s16_s10 = int_to_ptr.vmem [resolvable:$true] %s15_s10 }
   0x4   :  { %s94_s11 = scalar_lea.vmem %s16_s10, 640  ;;  %p99_p1 = scmp.lt.s32.totalorder %s16_s10, %s16_s10 }
   0x5   :  { %p95_p0 = scmp.ne.s32.totalorder %s16_s10, %s94_s11  ;;  %p100_p2 = scmp.lt.s32.totalorder %s94_s11, %s94_s11 }
   0x7   :  { %p101_p3 = por %p100_p2, %p99_p1 }
   0x9   :  { %p102_p4 = pnand %p101_p3, %p95_p0 }
   0xb   :  { %105 = shalt.err (!%p102_p4)
}
   0xc   :  { %s153_s12 = smov 128   ;;  %s154_s13 = smov 8  }
   0xd   :  { %21 = dma.hbm_to_vmem [thread:$0]  %s197_s0, 640, %s16_s10, [#allocation3], %s153_s12, %s153_s12, %s154_s13  }
   0xe   :  { %s155_s16 = smov [#allocation5]  }
   0xf   :  { %s28_s17 = sshll.u32 %s155_s16, 4  ;;  %s29_s17 = int_to_ptr.vmem [resolvable:$true] %s28_s17 }
  0x10   :  { %s114_s18 = scalar_lea.vmem %s29_s17, 128  ;;  %p119_p6 = scmp.lt.s32.totalorder %s29_s17, %s29_s17 }
  0x11   :  { %p115_p5 = scmp.ne.s32.totalorder %s29_s17, %s114_s18  ;;  %p120_p7 = scmp.lt.s32.totalorder %s114_s18, %s114_s18 }
  0x13   :  { %p121_p8 = por %p120_p7, %p119_p6 }
  0x15   :  { %p122_p9 = pnand %p121_p8, %p115_p5 }
  0x17   :  { %125 = shalt.err (!%p122_p9)
}
  0x18   :  { %31 = dma.hbm_to_vmem [thread:$0]  %s198_s1, 128, %s29_s17, [#allocation6]  }
  0x19   :  { %146 = dma.done.wait [#allocation3], 640  }
  0x1a   :  { %147 = vsyncadd [#allocation3], 4294966656 }
  0x1b   :  { %148 = dma.done.wait [#allocation6], 128  }
  0x1c   :  { %149 = vsyncadd [#allocation6], 4294967168  ;;  %vm39_vm0 = vcmask 253952   ;;  %vm50_vm1 = vcmask 261120   ;;  %s156_s0 = smov [#allocation7]   ;;  %v45_v1 = vld [vmem:[#allocation2] sm:$0xff] }
  0x1d   :  { %s68_s21 = sshll.u32 %s156_s0, 4  ;;  %v38_v0 = vld [vmem:[#allocation5] sm:$0x1]  ;;  %vm57_vm2 = vcmask 260096   ;;  %51 = vst.msk [vmem:[#allocation7 + $0x1] sm:$0xff] %vm50_vm1, %v45_v1  ;;  %v47_v3 = vld [vmem:[#allocation2 + $0x10] sm:$0xff]  ;;  %s69_s21 = int_to_ptr.vmem [resolvable:$true] %s68_s21 }
  0x1e   :  { %v46_v2 = vld [vmem:[#allocation2 + $0x8] sm:$0xff]  ;;  %40 = vst.msk [vmem:[#allocation7] sm:$0x1] %vm39_vm0, %v38_v0  ;;  %41 = vst.msk [vmem:[#allocation7 + $0x10] sm:$0x1] %vm39_vm0, %v38_v0  ;;  %v48_v4 = vld [vmem:[#allocation2 + $0x18] sm:$0xff]  ;;  %p131_p11 = scmp.lt.s32.totalorder %s69_s21, %s69_s21 }
  0x1f   :  { %42 = vst.msk [vmem:[#allocation7 + $0x20] sm:$0x1] %vm39_vm0, %v38_v0  ;;  %43 = vst.msk [vmem:[#allocation7 + $0x30] sm:$0x1] %vm39_vm0, %v38_v0  ;;  %v49_v5 = vld [vmem:[#allocation2 + $0x20] sm:$0xff]  ;;  %s126_s1 = scalar_lea.vmem %s69_s21, 1280 }
  0x20   :  { %44 = vst.msk [vmem:[#allocation7 + $0x40] sm:$0x1] %vm39_vm0, %v38_v0  ;;  %v56_v6 = vld [vmem:[#allocation5 + $0x1] sm:$0x7f]  ;;  %p127_p10 = scmp.ne.s32.totalorder %s69_s21, %s126_s1  ;;  %p132_p12 = scmp.lt.s32.totalorder %s126_s1, %s126_s1 }
  0x21   :  { %52 = vst.msk [vmem:[#allocation7 + $0x11] sm:$0xff] %vm50_vm1, %v46_v2  ;;  %53 = vst.msk [vmem:[#allocation7 + $0x21] sm:$0xff] %vm50_vm1, %v47_v3 }
  0x22   :  { %54 = vst.msk [vmem:[#allocation7 + $0x31] sm:$0xff] %vm50_vm1, %v48_v4  ;;  %55 = vst.msk [vmem:[#allocation7 + $0x41] sm:$0xff] %vm50_vm1, %v49_v5  ;;  %p133_p13 = por %p132_p12, %p131_p11 }
  0x23   :  { %58 = vst.msk [vmem:[#allocation7 + $0x9] sm:$0x7f] %vm57_vm2, %v56_v6  ;;  %59 = vst.msk [vmem:[#allocation7 + $0x19] sm:$0x7f] %vm57_vm2, %v56_v6 }
  0x24   :  { %60 = vst.msk [vmem:[#allocation7 + $0x29] sm:$0x7f] %vm57_vm2, %v56_v6  ;;  %61 = vst.msk [vmem:[#allocation7 + $0x39] sm:$0x7f] %vm57_vm2, %v56_v6  ;;  %p134_p0 = pnand %p133_p13, %p127_p10 }
  0x25   :  { %62 = vst.msk [vmem:[#allocation7 + $0x49] sm:$0x7f] %vm57_vm2, %v56_v6 }
  0x26   :  { %137 = shalt.err (!%p134_p0)
}
  0x27   :  { %74 = dma.vmem_to_hbm [thread:$0]  %s69_s21, 1280, %s199_s2, [#allocation4], %s153_s12, %s153_s12, %s154_s13  }
  0x28   :  { %150 = dma.done.wait [#allocation4], 1280  }
  0x29   :  { %151 = vsyncadd [#allocation4], 4294966016 }
  0x2a   :  { %78 = vsyncpa [#allocation3], 1 }
  0x2b   :  { %79 = vsyncpa [#allocation6], 1 }
  0x2c   :  { %80 = vsyncpa [#allocation4], 1 }

</bundles_post_ra>
